<compile_context>
chip_gen: v5e
topology: v5e:2x2
jax: 0.10.0
libtpu: 0.0.40
codegen_flags: <defaults>
</compile_context>

<pallas_src>
import functools

import jax
import jax.numpy as jnp
from jax.experimental import pallas as pl
from jax.experimental.pallas import tpu as pltpu


def _round_up(n, m):
    return ((n + m - 1) // m) * m


def _device_kind():
    try:
        return jax.devices()[0].device_kind.lower()
    except Exception:
        return ""


def _encoder_kernel(num_hidden, num_keypoints, cluster_weight_type, bf16_tanh,
                    *refs):
    # refs = [x_ref, w0, b0, w1, b1, ..., w_last, b_last, out_ref]
    n_params = 2 * (num_hidden + 1)
    x_ref = refs[0]
    param_refs = refs[1:1 + n_params]
    out_ref = refs[1 + n_params]

    k = x_ref[...]
    if num_hidden > 0:
        # bf16 MXU operands for the hidden chain (no-op if x is already bf16).
        k = k.astype(jnp.bfloat16)

    # Hidden layers: Linear (bf16 MXU, f32 accumulate) + bias + tanh.
    for i in range(num_hidden):
        w = param_refs[2 * i][...]            # bf16 (d_in, d_out)
        b = param_refs[2 * i + 1][...]        # f32  (1, d_out)
        acc = jnp.dot(k, w, preferred_element_type=jnp.float32) + b
        if bf16_tanh:
            # v6e/v7x: bf16 EUP path, folds the post-tanh cast.
            k = jnp.tanh(acc.astype(jnp.bfloat16))
        else:
            # v5e: no bf16 VPU/EUP path.
            k = jnp.tanh(acc).astype(jnp.bfloat16)

    # Final layer: f32 operands (cheap; tighter mu/logvar), no tanh.
    w_last = param_refs[2 * num_hidden][...]      # f32 (d_in, 3K)
    b_last = param_refs[2 * num_hidden + 1][...]  # f32 (1, 3K)
    kf = jnp.dot(k.astype(jnp.float32), w_last,
                 preferred_element_type=jnp.float32) + b_last

    K = num_keypoints
    kw = kf[:, 2 * K:3 * K]
    if cluster_weight_type == "softmax":
        # Numerically stable softmax with an exact divide (weights sum to 1).
        m = jnp.max(kw, axis=1, keepdims=True)
        e = jnp.exp(kw - m)
        weights = e / jnp.sum(e, axis=1, keepdims=True)
    elif cluster_weight_type == "sigmoid":
        weights = jax.nn.sigmoid(kw)
    elif cluster_weight_type == "vanilla":
        weights = jnp.ones_like(kw)
    else:
        # TODO(synk): PyTorch returns torch.empty(0) here; static output shapes
        # are required, so emit zeros instead.
        weights = jnp.zeros_like(kw)

    # Single merged output slab: columns [0:3K] = k, [3K:4K] = cluster weights.
    out_ref[...] = jnp.concatenate([kf, weights], axis=1)


def encoder_forward(x, params, num_keypoints, cluster_weight_type="softmax",
                    block_rows=1024):
    """params = [(W0, b0), ..., (W_last, b_last)], W_i: (in, out), b_i: (1, out) or (out,)."""
    B, D_in = x.shape
    K = num_keypoints
    num_hidden = len(params) - 1

    kind = _device_kind()
    bf16_tanh = ("v6" in kind) or ("v7" in kind)   # bf16 EUP/VPU generations
    multi_tc = "v7" in kind                        # 2 TensorCores per chip

    # Flatten params: hidden weights bf16 (MXU operands), final weights f32,
    # all biases f32 shaped (1, d_out).
    flat = []
    for li, (w, b) in enumerate(params):
        w_dtype = jnp.float32 if li == num_hidden else jnp.bfloat16
        flat.append(jnp.asarray(w, w_dtype))
        flat.append(jnp.asarray(b, jnp.float32).reshape(1, -1))

    # Row tile: multiple of 16 sublanes, as large as block_rows allows.
    tm = max(16, min(block_rows, _round_up(B, 16)))
    if multi_tc:
        # Ensure at least 2 grid steps so both v7x TensorCores get work.
        half = _round_up((B + 1) // 2, 16)
        if 16 <= half < tm:
            tm = half
    B_pad = _round_up(B, tm)

    # Accept bf16 input directly (halves input DMA); otherwise keep f32 and
    # let the kernel cast (no extra un-fused wrapper cast pass).
    x_in = x if x.dtype == jnp.bfloat16 else jnp.asarray(x, jnp.float32)
    if B_pad != B:
        x_in = jnp.pad(x_in, ((0, B_pad - B), (0, 0)))
    grid = (B_pad // tm,)

    kernel = functools.partial(
        _encoder_kernel, num_hidden, num_keypoints, cluster_weight_type,
        bf16_tanh,
    )

    in_specs = [pl.BlockSpec((tm, D_in), lambda i: (i, 0))]
    for a in flat:
        # Replicated (constant index_map) weight/bias blocks.
        in_specs.append(pl.BlockSpec(a.shape, lambda i: (0, 0)))

    out_shape = jax.ShapeDtypeStruct((B_pad, 4 * K), jnp.float32)
    out_spec = pl.BlockSpec((tm, 4 * K), lambda i: (i, 0))

    # Advisory cost estimate for the XLA scheduler.
    dims = [D_in] + [w.shape[1] for (w, _) in params]
    flops = 0
    transcendentals = 0
    for i in range(num_hidden):
        flops += 2 * B_pad * dims[i] * dims[i + 1]
        transcendentals += B_pad * dims[i + 1]          # tanh
    flops += 2 * B_pad * dims[num_hidden] * (3 * K)
    transcendentals += B_pad * K                        # softmax exp
    bytes_accessed = (
        x_in.size * x_in.dtype.itemsize
        + sum(a.size * a.dtype.itemsize for a in flat)
        + B_pad * 4 * K * 4
    )

    out = pl.pallas_call(
        kernel,
        grid=grid,
        out_shape=out_shape,
        in_specs=in_specs,
        out_specs=out_spec,
        compiler_params=pltpu.CompilerParams(
            dimension_semantics=("parallel",),
            vmem_limit_bytes=32 * 1024 * 1024,
        ),
        cost_estimate=pl.CostEstimate(
            flops=flops,
            transcendentals=transcendentals,
            bytes_accessed=bytes_accessed,
        ),
    )(x_in, *flat)

    if B_pad != B:
        out = out[:B]

    # Merged slab sliced in the wrapper (no redundant lane-sparse stores).
    k_full = out[:, :3 * K]
    weights = out[:, 3 * K:]
    mu = k_full[:, :K]
    logvar = k_full[:, K:2 * K]
    return mu, logvar, weights, k_full


def make_params(key, layer_size_list_struct, num_layers):
    """Deterministic synthetic parameters mirroring the module's __init__.

    Hidden Linears: sizes[i] -> sizes[i+1] for i in 0..num_layers-2
    Final Linear:   sizes[-2] -> 3 * sizes[-1]
    """
    params = []
    sizes = layer_size_list_struct
    for i in range(num_layers - 1):
        d_in, d_out = sizes[i], sizes[i + 1]
        key, kw, kb = jax.random.split(key, 3)
        w = jax.random.normal(kw, (d_in, d_out), jnp.float32) * 0.1
        b = jax.random.normal(kb, (1, d_out), jnp.float32) * 0.1
        params.append((w, b))
    d_in, d_out = sizes[-2], 3 * sizes[-1]
    key, kw, kb = jax.random.split(key, 3)
    w = jax.random.normal(kw, (d_in, d_out), jnp.float32) * 0.1
    b = jax.random.normal(kb, (1, d_out), jnp.float32) * 0.1
    params.append((w, b))
    return params


def reference_forward(x, params, num_keypoints, cluster_weight_type="softmax"):
    """Pure-JAX f32 reference of the PyTorch forward."""
    k = x
    for (w, b) in params[:-1]:
        k = jnp.tanh(k @ w + b)
    w, b = params[-1]
    k = k @ w + b
    K = num_keypoints
    mu = k[:, :K]
    logvar = k[:, K:2 * K]
    kw = k[:, 2 * K:3 * K]
    if cluster_weight_type == "softmax":
        kw = jax.nn.softmax(kw, axis=1)
    elif cluster_weight_type == "sigmoid":
        kw = jax.nn.sigmoid(kw)
    elif cluster_weight_type == "vanilla":
        kw = jnp.ones_like(kw)
    else:
        kw = jnp.zeros_like(kw)
    return mu, logvar, kw, k


if __name__ == "__main__":
    # Small, consistent configuration:
    #   num_layers = 3  -> 2 hidden Linear+tanh layers, then a final Linear.
    #   layer_size_list_struct = [16, 32, 24, 8]:
    #     hidden: 16 -> 32 -> 24 ; final: 24 -> 3*8 = 24 ; num_keypoints = 8.
    num_layers = 3
    layer_size_list_struct = [16, 32, 24, 8]
    num_keypoints = layer_size_list_struct[-1]
    cluster_weight_type = "softmax"
    batch = 8

    key = jax.random.PRNGKey(0)
    key, kx = jax.random.split(key)
    x = jax.random.normal(kx, (batch, layer_size_list_struct[0]), jnp.float32)
    params = make_params(key, layer_size_list_struct, num_layers)

    mu, logvar, weights, k_full = encoder_forward(
        x, params, num_keypoints, cluster_weight_type
    )
    jax.block_until_ready((mu, logvar, weights, k_full))

    # Correctness check vs. pure-JAX f32 reference (tolerance relaxed because
    # hidden layers use bf16 MXU operands with f32 accumulation).
    rmu, rlogvar, rweights, rk = reference_forward(
        x, params, num_keypoints, cluster_weight_type
    )
    atol = 2e-2
    assert jnp.allclose(mu, rmu, atol=atol), "mu mismatch"
    assert jnp.allclose(logvar, rlogvar, atol=atol), "logvar mismatch"
    assert jnp.allclose(weights, rweights, atol=atol), "weights mismatch"
    assert jnp.allclose(k_full, rk, atol=atol), "k mismatch"
    assert mu.shape == (batch, num_keypoints)
    assert k_full.shape == (batch, 3 * num_keypoints)
    # Softmax weights should be normalized (exact divide in the kernel).
    assert jnp.allclose(jnp.sum(weights, axis=1), 1.0, atol=1e-5)

    print("KERNEL_OK")
</pallas_src>

<mosaic_0001>
module attributes {stable_mosaic.version = 11 : i64} {
  func.func @_encoder_kernel(%arg0: i32, %arg1: memref<16x16xf32, #tpu.memory_space<vmem>>, %arg2: memref<16x32xbf16, #tpu.memory_space<vmem>>, %arg3: memref<1x32xf32, #tpu.memory_space<vmem>>, %arg4: memref<32x24xbf16, #tpu.memory_space<vmem>>, %arg5: memref<1x24xf32, #tpu.memory_space<vmem>>, %arg6: memref<24x24xf32, #tpu.memory_space<vmem>>, %arg7: memref<1x24xf32, #tpu.memory_space<vmem>>, %arg8: memref<16x32xf32, #tpu.memory_space<vmem>>) attributes {dimension_semantics = [#tpu.dimension_semantics<parallel>], iteration_bounds = array<i64: 1>, scalar_prefetch = 0 : i64, scratch_operands = 0 : i64, tpu.core_type = #tpu.core_type<tc>, window_params = [{transform_indices = @transform_0, window_bounds = array<i64: 16, 16>}, {pipeline_mode = #tpu.pipeline_mode<synchronous>, transform_indices = @transform_1, window_bounds = array<i64: 16, 32>}, {pipeline_mode = #tpu.pipeline_mode<synchronous>, transform_indices = @transform_2, window_bounds = array<i64: 1, 32>}, {pipeline_mode = #tpu.pipeline_mode<synchronous>, transform_indices = @transform_3, window_bounds = array<i64: 32, 24>}, {pipeline_mode = #tpu.pipeline_mode<synchronous>, transform_indices = @transform_4, window_bounds = array<i64: 1, 24>}, {pipeline_mode = #tpu.pipeline_mode<synchronous>, transform_indices = @transform_5, window_bounds = array<i64: 24, 24>}, {pipeline_mode = #tpu.pipeline_mode<synchronous>, transform_indices = @transform_6, window_bounds = array<i64: 1, 24>}, {transform_indices = @transform_7, window_bounds = array<i64: 16, 32>}]} {
    %c0 = arith.constant 0 : index
    %c0_0 = arith.constant 0 : index
    %0 = vector.load %arg1[%c0, %c0_0] : memref<16x16xf32, #tpu.memory_space<vmem>>, vector<16x16xf32>
    %1 = arith.truncf %0 : vector<16x16xf32> to vector<16x16xbf16>
    %c0_1 = arith.constant 0 : index
    %c0_2 = arith.constant 0 : index
    %2 = vector.load %arg2[%c0_1, %c0_2] : memref<16x32xbf16, #tpu.memory_space<vmem>>, vector<16x32xbf16>
    %c0_3 = arith.constant 0 : index
    %c0_4 = arith.constant 0 : index
    %3 = vector.load %arg3[%c0_3, %c0_4] : memref<1x32xf32, #tpu.memory_space<vmem>>, vector<1x32xf32>
    %cst = arith.constant dense<0.000000e+00> : vector<16x32xf32>
    %4 = tpu.matmul %1, %2, %cst {dimension_numbers = #tpu.dot_dimension_numbers<[1], [0], [0], [1], [0, 0, 1, 1], [], []>} : vector<16x16xbf16>, vector<16x32xbf16>, vector<16x32xf32> -> vector<16x32xf32>
    %5 = vector.broadcast %3 : vector<1x32xf32> to vector<16x32xf32>
    %6 = arith.addf %4, %5 : vector<16x32xf32>
    %7 = math.tanh %6 : vector<16x32xf32>
    %8 = arith.truncf %7 : vector<16x32xf32> to vector<16x32xbf16>
    %c0_5 = arith.constant 0 : index
    %c0_6 = arith.constant 0 : index
    %9 = vector.load %arg4[%c0_5, %c0_6] : memref<32x24xbf16, #tpu.memory_space<vmem>>, vector<32x24xbf16>
    %c0_7 = arith.constant 0 : index
    %c0_8 = arith.constant 0 : index
    %10 = vector.load %arg5[%c0_7, %c0_8] : memref<1x24xf32, #tpu.memory_space<vmem>>, vector<1x24xf32>
    %cst_9 = arith.constant dense<0.000000e+00> : vector<16x24xf32>
    %11 = tpu.matmul %8, %9, %cst_9 {dimension_numbers = #tpu.dot_dimension_numbers<[1], [0], [0], [1], [0, 0, 1, 1], [], []>} : vector<16x32xbf16>, vector<32x24xbf16>, vector<16x24xf32> -> vector<16x24xf32>
    %12 = vector.broadcast %10 : vector<1x24xf32> to vector<16x24xf32>
    %13 = arith.addf %11, %12 : vector<16x24xf32>
    %14 = math.tanh %13 : vector<16x24xf32>
    %15 = arith.truncf %14 : vector<16x24xf32> to vector<16x24xbf16>
    %c0_10 = arith.constant 0 : index
    %c0_11 = arith.constant 0 : index
    %16 = vector.load %arg6[%c0_10, %c0_11] : memref<24x24xf32, #tpu.memory_space<vmem>>, vector<24x24xf32>
    %c0_12 = arith.constant 0 : index
    %c0_13 = arith.constant 0 : index
    %17 = vector.load %arg7[%c0_12, %c0_13] : memref<1x24xf32, #tpu.memory_space<vmem>>, vector<1x24xf32>
    %18 = arith.extf %15 : vector<16x24xbf16> to vector<16x24xf32>
    %cst_14 = arith.constant dense<0.000000e+00> : vector<16x24xf32>
    %19 = tpu.matmul %18, %16, %cst_14 {dimension_numbers = #tpu.dot_dimension_numbers<[1], [0], [0], [1], [0, 0, 1, 1], [], []>} : vector<16x24xf32>, vector<24x24xf32>, vector<16x24xf32> -> vector<16x24xf32>
    %20 = vector.broadcast %17 : vector<1x24xf32> to vector<16x24xf32>
    %21 = arith.addf %19, %20 : vector<16x24xf32>
    %22 = vector.extract_strided_slice %21 {offsets = [0, 16], sizes = [16, 8], strides = [1, 1]} : vector<16x24xf32> to vector<16x8xf32>
    %cst_15 = arith.constant dense<0xFF800000> : vector<16xf32>
    %23 = vector.multi_reduction <maximumf>, %22, %cst_15 [1] : vector<16x8xf32> to vector<16xf32>
    %24 = vector.shape_cast %23 : vector<16xf32> to vector<16x1xf32>
    %25 = vector.broadcast %24 : vector<16x1xf32> to vector<16x8xf32>
    %26 = arith.subf %22, %25 : vector<16x8xf32>
    %27 = math.exp %26 : vector<16x8xf32>
    %cst_16 = arith.constant dense<0.000000e+00> : vector<16xf32>
    %28 = vector.multi_reduction <add>, %27, %cst_16 [1] : vector<16x8xf32> to vector<16xf32>
    %29 = vector.shape_cast %28 : vector<16xf32> to vector<16x1xf32>
    %30 = vector.broadcast %29 : vector<16x1xf32> to vector<16x8xf32>
    %31 = arith.divf %27, %30 : vector<16x8xf32>
    %32 = tpu.concatenate %21, %31 in 1 : vector<16x24xf32>, vector<16x8xf32> -> vector<16x32xf32>
    %c0_17 = arith.constant 0 : index
    %c0_18 = arith.constant 0 : index
    %33 = vector.load %arg8[%c0_17, %c0_18] : memref<16x32xf32, #tpu.memory_space<vmem>>, vector<16x32xf32>
    tpu.vector_store %arg8[%c0_17, %c0_18], %32 {strides = array<i32>} : memref<16x32xf32, #tpu.memory_space<vmem>>, vector<16x32xf32>,
    return
  }
  func.func @transform_0(%arg0: i32) -> (i32, i32) {
    %c0_i32 = arith.constant 0 : i32
    %c0_i32_0 = arith.constant 0 : i32
    return %arg0, %c0_i32 : i32, i32
  }
  func.func @transform_1(%arg0: i32) -> (i32, i32) {
    %c0_i32 = arith.constant 0 : i32
    %c0_i32_0 = arith.constant 0 : i32
    %c0_i32_1 = arith.constant 0 : i32
    return %c0_i32, %c0_i32_0 : i32, i32
  }
  func.func @transform_2(%arg0: i32) -> (i32, i32) {
    %c0_i32 = arith.constant 0 : i32
    %c0_i32_0 = arith.constant 0 : i32
    %c0_i32_1 = arith.constant 0 : i32
    return %c0_i32, %c0_i32_0 : i32, i32
  }
  func.func @transform_3(%arg0: i32) -> (i32, i32) {
    %c0_i32 = arith.constant 0 : i32
    %c0_i32_0 = arith.constant 0 : i32
    %c0_i32_1 = arith.constant 0 : i32
    return %c0_i32, %c0_i32_0 : i32, i32
  }
  func.func @transform_4(%arg0: i32) -> (i32, i32) {
    %c0_i32 = arith.constant 0 : i32
    %c0_i32_0 = arith.constant 0 : i32
    %c0_i32_1 = arith.constant 0 : i32
    return %c0_i32, %c0_i32_0 : i32, i32
  }
  func.func @transform_5(%arg0: i32) -> (i32, i32) {
    %c0_i32 = arith.constant 0 : i32
    %c0_i32_0 = arith.constant 0 : i32
    %c0_i32_1 = arith.constant 0 : i32
    return %c0_i32, %c0_i32_0 : i32, i32
  }
  func.func @transform_6(%arg0: i32) -> (i32, i32) {
    %c0_i32 = arith.constant 0 : i32
    %c0_i32_0 = arith.constant 0 : i32
    %c0_i32_1 = arith.constant 0 : i32
    return %c0_i32, %c0_i32_0 : i32, i32
  }
  func.func @transform_7(%arg0: i32) -> (i32, i32) {
    %c0_i32 = arith.constant 0 : i32
    %c0_i32_0 = arith.constant 0 : i32
    return %arg0, %c0_i32 : i32, i32
  }
}

</mosaic_0001>

<bundles_post_ra>
// kernel: tpu_custom_call.1
= control target key start
LH: loop header
LB: loop body
LE: loop exit
PB: predicated region body
PF: predicated region fallthrough
CT: control target
= control target key end

     0   :  { %12 = vsyncpa [#allocation3], 0  ;;  %s529_s0 = inlined_call_operand.hbm [shape: f32[16,16], index: 0, kind: input, shape index: {}]   ;;  %s530_s1 = inlined_call_operand.vmem [shape: bf16[16,32], index: 1, kind: input, shape index: {}]   ;;  %s531_s2 = inlined_call_operand.hbm [shape: f32[1,32], index: 2, kind: input, shape index: {}]   ;;  %s532_s3 = inlined_call_operand.vmem [shape: bf16[32,24], index: 3, kind: input, shape index: {}]   ;;  %s533_s4 = inlined_call_operand.hbm [shape: f32[1,24], index: 4, kind: input, shape index: {}]   ;;  %s534_s5 = inlined_call_operand.vmem [shape: f32[24,24], index: 5, kind: input, shape index: {}]   ;;  %s535_s6 = inlined_call_operand.vmem [shape: f32[1,24], index: 6, kind: input, shape index: {}]   ;;  %s536_s7 = inlined_call_operand.hbm [shape: f32[16,32], index: 7, kind: output, shape index: {}]  }
   0x1   :  { %13 = vsyncpa [#allocation6], 0  ;;  %s35_s26 = sshll.u32 %s531_s2, 4  ;;  %s36_s26 = int_to_ptr.hbm [resolvable:$true] %s35_s26 }
   0x2   :  { %14 = vsyncpa [#allocation4], 0  ;;  %s424_s27 = smov [#allocation5]   ;;  %s19_s8 = sshll.u32 %s529_s0, 4  ;;  %s20_s8 = int_to_ptr.hbm [resolvable:$true] %s19_s8 }
   0x3   :  { %s37_s28 = sshll.u32 %s424_s27, 4  ;;  %s425_s9 = smov [#allocation2]   ;;  %s38_s28 = int_to_ptr.vmem [resolvable:$true] %s37_s28 }
   0x4   :  { %40 = dma.hbm_to_vmem [thread:$0]  %s36_s26, 16, %s38_s28, [#allocation6]  }
   0x5   :  { %s21_s10 = sshll.u32 %s425_s9, 4  ;;  %s426_s11 = smov 128   ;;  %s22_s10 = int_to_ptr.vmem [resolvable:$true] %s21_s10 }
   0x6   :  { %s427_s12 = smov 8   ;;  %s48_s14 = sshll.u32 %s533_s4, 4  ;;  %s49_s14 = int_to_ptr.hbm [resolvable:$true] %s48_s14 }
   0x7   :  { %27 = dma.hbm_to_vmem [thread:$0]  %s20_s8, 256, %s22_s10, [#allocation3], %s426_s11, %s426_s11, %s427_s12  }
   0x8   :  { %s428_s15 = smov [#allocation7]  }
   0x9   :  { %s50_s16 = sshll.u32 %s428_s15, 4  ;;  %s51_s16 = int_to_ptr.vmem [resolvable:$true] %s50_s16 }
   0xa   :  { %53 = dma.hbm_to_vmem [thread:$0]  %s49_s14, 16, %s51_s16, [#allocation6]  }
   0xb   :  { %418 = dma.done.wait [#allocation3], 256  }
   0xc   :  { %419 = vsyncadd [#allocation3], 4294967040 }
   0xd   :  { %420 = dma.done.wait [#allocation6], 32  }
   0xe   :  { %421 = vsyncadd [#allocation6], 4294967264  ;;  %v293_v0 = vld [vmem:[%s530_s1] sm:$0xff]  ;;  %v72_v2 = vld [vmem:[#allocation2 + $0x8] sm:$0xff]  ;;  %vm86_vm0 = vcmask 130048   ;;  %vm127_vm1 = vcmask 261120  }
   0xf   :  { %v71_v1 = vld [vmem:[#allocation2] sm:$0xff]  ;;  %97 = vmatpush.bf16.msra.mxu0 %v293_v0  ;;  %v295_v4 = vld [vmem:[%s532_s3 + $0x8] sm:$0xff]  ;;  %v303_v7 = vld [vmem:[#allocation5] ss:$0 sm:$0xff]  ;;  %vm157_vm2 = vcmask 195584   ;;  %vm187_vm3 = vcmask 195712  }
  0x10   :  { %v73_v3 = vpack.c.bf16 %v72_v2, %v71_v1  ;;  %137 = vmatpush.bf16.msra.mxu1 %v295_v4  ;;  %v294_v5 = vld [vmem:[%s532_s3] sm:$0xff]  ;;  %v150_v14 = vld [vmem:[%s534_s5 + $0x10] sm:$0xff]  ;;  %v149_v15 = vld [vmem:[%s534_s5 + $0x8] sm:$0xff]  ;;  %vm208_vm4 = vcmask 64512   ;;  %s263_s30 = sshll.u32 %s536_s7, 4  ;;  %s264_s30 = int_to_ptr.hbm [resolvable:$true] %s263_s30 }
  0x11   :  { %177 = vmatpush.msra.mxu2 %v150_v14  ;;  %v148_v16 = vld [vmem:[%s534_s5] sm:$0xff]  ;;  %v304_v17 = vld [vmem:[#allocation7] ss:$0 sm:$0xff]  ;;  %s429_s5 = smov 112  }
  0x12   :  { %281 = vmatmul.msk.bf16.vlgmr.msra.gmra.mxu0 %vm86_vm0, %v73_v3  ;;  %v305_v24 = vld [vmem:[%s535_s6] ss:$0 sm:$0xff]  ;;  %s430_s6 = smov [#allocation8]  }
  0x13   :  { %178 = vmatpush.msra.mxu2 %v149_v15  ;;  %s261_s27 = sshll.u32 %s430_s6, 4  ;;  %s262_s27 = int_to_ptr.vmem [resolvable:$true] %s261_s27 }
  0x14   :  { %138 = vmatpush.bf16.msra.mxu1 %v294_v5 }
  0x15   :  { %179 = vmatpush.msra.mxu2 %v148_v16 }
  0x8f   :  { %v99_v6 = vpop.f32.mrf.mxu0 }
  0x90   :  { %v100_v8 = vadd.f32 %v303_v7, %v99_v6 }
  0x92   :  { %306 = vtanh.f32 %v100_v8 }
  0x97   :  { %v101_v9 = vpop.f32.mrf.mxu0 }
  0x98   :  { %v102_v10 = vadd.f32 %v303_v7, %v101_v9  ;;  %v307_v11 = vpop.eup %306 }
  0x9a   :  { %308 = vtanh.f32 %v102_v10 }
  0xa0   :  { %v309_v12 = vpop.eup %308 }
  0xa1   :  { %v106_v13 = vpack.c.bf16 %v309_v12, %v307_v11 }
  0xa3   :  { %290 = vmatmul.msk.bf16.vlgmr.msra.gmra.mxu1 %vm127_vm1, %v106_v13 }
 0x120   :  { %v140_v18 = vpop.f32.mrf.mxu1 }
 0x121   :  { %v141_v19 = vadd.f32 %v304_v17, %v140_v18 }
 0x123   :  { %310 = vtanh.f32 %v141_v19 }
 0x128   :  { %v142_v20 = vpop.f32.mrf.mxu1 }
 0x129   :  { %v311_v21 = vpop.eup %310  ;;  %v143_v22 = vadd.f32 %v304_v17, %v142_v20 }
 0x12a   :  { %291 = vmatmul.msk.f32.vlgmr.msra.gmra.mxu2 %vm157_vm2, %v311_v21 }
 0x12b   :  { %312 = vtanh.f32 %v143_v22 }
 0x131   :  { %v313_v23 = vpop.eup %312 }
 0x132   :  { %292 = vmatmul.msk.f32.gmra.mxu2 %vm157_vm2, %v313_v23 }
 0x1ad   :  { %v181_v25 = vpop.f32.mrf.mxu2 }
 0x1ae   :  { %v507_v26 = vadd.f32 %v305_v24, %v181_v25 }
 0x1b0   :  { %v188_v27 = vsel %vm187_vm3, %v507_v26, -inf }
 0x1b1   :  { %189 = vmax.xlane.f32.xlu0 %v188_v27 }
 0x1b5   :  { %v184_v28 = vpop.f32.mrf.mxu2 }
 0x1b6   :  { %v510_v29 = vadd.f32 %v305_v24, %v184_v28 }
 0x1b8   :  { %v191_v30 = vsel %vm187_vm3, %v510_v29, -inf }
 0x1b9   :  { %192 = vmax.xlane.f32.xlu0 %v191_v30 }
 0x224   :  { %v190_v31 = vpop.xlane.xlu0 %189 }
 0x225   :  { %v194_v32 = vsub.f32 %v507_v26, %v190_v31 }
 0x227   :  { %v196_v33 = vmul.f32 1.442695, %v194_v32 }
 0x229   :  { %314 = vpow2.f32 %v196_v33 }
 0x22c   :  { %v193_v34 = vpop.xlane.xlu0 %192 }
 0x22d   :  { %v195_v35 = vsub.f32 %v510_v29, %v193_v34 }
 0x22f   :  { %v315_v36 = vpop.eup %314  ;;  %v198_v37 = vmul.f32 1.442695, %v195_v35 }
 0x230   :  { %202 = vrot.lane.b32.xlu1 %v315_v36, %s429_s5 }
 0x231   :  { %316 = vpow2.f32 %v198_v37 }
 0x237   :  { %v317_v38 = vpop.eup %316 }
 0x238   :  { %204 = vrot.lane.b32.xlu1 %v317_v38, %s429_s5 }
 0x2a2   :  { %v203_v39 = vpop.permute.xlu1 %202 }
 0x2a3   :  { %v209_v40 = vsel %vm208_vm4, %v203_v39, 0.0 }
 0x2a4   :  { %210 = vadd.xlane.f32.xlu2 %v209_v40 }
 0x2aa   :  { %v205_v41 = vpop.permute.xlu1 %204 }
 0x2ab   :  { %v212_v42 = vsel %vm208_vm4, %v205_v41, 0.0 }
 0x2ac   :  { %213 = vadd.xlane.f32.xlu2 %v212_v42 }
 0x317   :  { %v211_v43 = vpop.xlane.xlu2 %210 }
 0x318   :  { %318 = vrcp.f32 %v211_v43  ;;  %v226_v48 = vand.u32 2147483648, %v211_v43  ;;  %v224_v50 = vand.u32 2147483647, %v211_v43  ;;  %vm220_vm6 = vweird.f32 %v211_v43 }
 0x31a   :  { %v227_v53 = vor.u32 1.1754944e-38, %v226_v48  ;;  %vm225_vm8 = vcmp.eq.f32.partialorder %v224_v50, 8.507059e+37 }
 0x31e   :  { %v319_v44 = vpop.eup %318 }
 0x31f   :  { %v216_v45 = vmul.f32 %v319_v44, %v211_v43  ;;  %v214_v46 = vpop.xlane.xlu2 %213  ;;  %vm221_vm5 = vweird.f32 %v319_v44 }
 0x320   :  { %320 = vrcp.f32 %v214_v46  ;;  %vm222_vm7 = vmor %vm220_vm6, %vm221_vm5  ;;  %v241_v59 = vand.u32 2147483648, %v214_v46  ;;  %v239_v61 = vand.u32 2147483647, %v214_v46  ;;  %vm235_vm10 = vweird.f32 %v214_v46 }
 0x321   :  { %v217_v47 = vsub.f32 1.0, %v216_v45 }
 0x322   :  { %v242_v63 = vor.u32 1.1754944e-38, %v241_v59  ;;  %vm240_vm12 = vcmp.eq.f32.partialorder %v239_v61, 8.507059e+37 }
 0x323   :  { %v218_v49 = vmul.f32 %v319_v44, %v217_v47 }
 0x325   :  { %v219_v51 = vadd.f32 %v319_v44, %v218_v49 }
 0x326   :  { %v321_v52 = vpop.eup %320 }
 0x327   :  { %v231_v54 = vmul.f32 %v321_v52, %v214_v46  ;;  %v223_v55 = vsel %vm222_vm7, %v319_v44, %v219_v51  ;;  %vm236_vm9 = vweird.f32 %v321_v52 }
 0x328   :  { %v228_v56 = vsel %vm225_vm8, %v227_v53, %v223_v55  ;;  %vm237_vm11 = vmor %vm235_vm10, %vm236_vm9 }
 0x329   :  { %v232_v57 = vsub.f32 1.0, %v231_v54  ;;  %v229_v58 = vmul.f32 %v315_v36, %v228_v56 }
 0x32b   :  { %v233_v60 = vmul.f32 %v321_v52, %v232_v57  ;;  %247 = vrot.lane.b32.xlu0 %v229_v58, %s427_s12 }
 0x32d   :  { %v234_v62 = vadd.f32 %v321_v52, %v233_v60 }
 0x32f   :  { %v238_v0 = vsel %vm237_vm11, %v321_v52, %v234_v62 }
 0x330   :  { %v243_v1 = vsel %vm240_vm12, %v242_v63, %v238_v0 }
 0x331   :  { %v244_v2 = vmul.f32 %v317_v38, %v243_v1 }
 0x333   :  { %249 = vrot.lane.b32.xlu1 %v244_v2, %s427_s12 }
 0x39d   :  { %v248_v3 = vpop.permute.xlu0 %247 }
 0x39e   :  { %v253_v4 = vsel %vm157_vm2, %v507_v26, %v248_v3 }
 0x39f   :  { %255 = vst.msk [vmem:[#allocation8] sm:$0xff] %vm127_vm1, %v253_v4 }
 0x3a5   :  { %v250_v5 = vpop.permute.xlu1 %249 }
 0x3a6   :  { %v254_v6 = vsel %vm157_vm2, %v510_v29, %v250_v5 }
 0x3a7   :  { %256 = vst.msk [vmem:[#allocation8 + $0x8] sm:$0xff] %vm127_vm1, %v254_v6 }
 0x3a8   :  { %269 = dma.vmem_to_hbm [thread:$0]  %s262_s27, 256, %s264_s30, [#allocation4], %s426_s11, %s426_s11, %s427_s12  }
 0x3a9   :  { %422 = dma.done.wait [#allocation4], 256  }
 0x3aa   :  { %423 = vsyncadd [#allocation4], 4294967040 }
 0x3ab   :  { %274 = vsyncpa [#allocation3], 1 }
 0x3ac   :  { %275 = vsyncpa [#allocation6], 1 }
 0x3ad   :  { %276 = vsyncpa [#allocation4], 1 }

</bundles_post_ra>
